<compile_context>
chip_gen: v6e
topology: v6e:2x2x1
jax: 0.10.0
libtpu: 0.0.40
codegen_flags: <defaults>
</compile_context>

<pallas_src>
import jax
import jax.numpy as jnp
from jax.experimental import pallas as pl
from jax.experimental.pallas import tpu as pltpu


def _packed_classifier_kernel(x_ref, w_ref, b_ref, s_ref, o_ref):
    # x_ref: (tb, pack*L)      bf16  -- `pack` samples packed per lane row
    # w_ref: (pack*L, pack*C)  bf16  -- block-diagonal weight (VMEM-resident)
    # b_ref: (1, pack*C)       f32   -- bias tiled `pack` times (VMEM-resident)
    # s_ref: (pack*C, pack*C)  f32   -- block-diagonal ones (group-sum matrix)
    # o_ref: (tb, pack*C)            -- packed per-sample probabilities
    #
    # Linear: packed logits on the MXU (bf16 operands, f32 accumulation).
    logits = jnp.dot(x_ref[...], w_ref[...],
                     preferred_element_type=jnp.float32) + b_ref[...]

    # Shared stability max over the full 128-lane row: one XLU reduce serves all
    # `pack` samples in the row.  Softmax per 8-class group is invariant to this
    # shared constant.  NOTE: if one sample's max were hugely below the row max
    # its exps could underflow; harmless for these small-magnitude 8-class logits.
    m = jnp.max(logits, axis=-1, keepdims=True)
    e = jnp.exp(logits - m)

    # Per-sample (8-class group) sums via a block-diagonal ones matmul on the
    # otherwise-idle MXU: each lane receives its own group's denominator, so the
    # normalization is a dense elementwise divide (no sparse XLU reductions).
    denom = jnp.dot(e, s_ref[...], preferred_element_type=jnp.float32)
    o_ref[...] = (e / denom).astype(o_ref.dtype)


def _default_max_rows_per_tile():
    # ~131K samples (≈24 MiB double-buffered) fits comfortably in v5e/v6e's
    # 128 MiB VMEM; v7x has only 64 MiB per TensorCore, so halve the tile there.
    try:
        vmem = int(pltpu.get_tpu_info().vmem_capacity_bytes)
        return 131072 if vmem >= (96 << 20) else 65536
    except Exception:
        return 65536  # conservative default sized for v7x


def m1_vae_classifier(x, w_t, b, *, max_rows_per_tile=None,
                      out_dtype=jnp.float32):
    """x: (B, L) f32, w_t: (L, C) f32 (transposed PyTorch weight), b: (1|/,C) f32.

    Returns (B, C) class probabilities (softmax over the last axis).
    """
    B, L = x.shape
    Lw, C = w_t.shape
    assert Lw == L, "weight must be stored transposed as (latent, classes)"
    if max_rows_per_tile is None:
        max_rows_per_tile = _default_max_rows_per_tile()

    # ---- packed layout: `pack` samples per 128-lane row --------------------
    pack = max(1, 128 // C)              # 16 for C=8
    Lp, Cp = pack * L, pack * C          # 512, 128

    Bp = ((B + pack - 1) // pack) * pack
    if Bp != B:
        x = jnp.pad(x, ((0, Bp - B), (0, 0)))   # pad batch to a multiple of pack
    rows = Bp // pack

    # bf16 matmul operands halve the dominant x HBM stream; softmax stays f32.
    x_packed = x.astype(jnp.bfloat16).reshape(rows, Lp)
    eye = jnp.eye(pack, dtype=jnp.float32)
    w_bd = jnp.kron(eye, w_t.astype(jnp.float32)).astype(jnp.bfloat16)  # (Lp, Cp)
    b_tiled = jnp.tile(jnp.reshape(b, (1, C)).astype(jnp.float32), (1, pack))
    s_bd = jnp.kron(eye, jnp.ones((C, C), jnp.float32))                 # (Cp, Cp)

    # ---- batch tiling (packed rows) -----------------------------------------
    tbp_cap = max(8, (max_rows_per_tile // pack // 8) * 8)
    tbp = rows if rows <= tbp_cap else tbp_cap   # full-dim block when small
    grid = (pl.cdiv(rows, tbp),)

    # ---- VMEM accounting: lane-dense tiles, explicit x2 double buffering ----
    itemsize_out = jnp.dtype(out_dtype).itemsize
    x_tile = tbp * Lp * 2                       # bf16 input tile
    o_tile = tbp * Cp * itemsize_out            # output tile (lane-dense)
    const = Lp * Cp * 2 + 8 * Cp * 4 + Cp * Cp * 4   # w_bd + padded bias + sum mat
    vmem_limit = int(min(max(2 * (x_tile + o_tile + const) + (2 << 20),
                             8 << 20),
                         32 << 20))

    cost = pl.CostEstimate(
        flops=2 * rows * Lp * Cp + 2 * rows * Cp * Cp,
        transcendentals=rows * Cp,
        bytes_accessed=(rows * Lp * 2 + Lp * Cp * 2 + Cp * 4
                        + Cp * Cp * 4 + rows * Cp * itemsize_out),
    )

    out_packed = pl.pallas_call(
        _packed_classifier_kernel,
        out_shape=jax.ShapeDtypeStruct((rows, Cp), out_dtype),
        grid=grid,
        in_specs=[
            pl.BlockSpec((tbp, Lp), lambda i: (i, 0)),   # stream packed x tiles
            pl.BlockSpec((Lp, Cp), lambda i: (0, 0)),    # block-diag W, resident
            pl.BlockSpec((1, Cp), lambda i: (0, 0)),     # tiled bias, resident
            pl.BlockSpec((Cp, Cp), lambda i: (0, 0)),    # group-sum mat, resident
        ],
        out_specs=pl.BlockSpec((tbp, Cp), lambda i: (i, 0)),
        compiler_params=pltpu.CompilerParams(
            dimension_semantics=("parallel",),   # dual-TC split on v7x
            vmem_limit_bytes=vmem_limit,
        ),
        cost_estimate=cost,
    )(x_packed, w_bd, b_tiled, s_bd)

    # Unpack (rows, pack*C) -> (Bp, C) and drop the padding rows.
    return out_packed.reshape(Bp, C)[:B]


def init_params(key, latent_space, num_of_classes):
    """Deterministic init mimicking nn.Linear's uniform(-1/sqrt(L), 1/sqrt(L))."""
    kw, kb = jax.random.split(key)
    bound = 1.0 / (latent_space ** 0.5)
    # PyTorch stores weight as (C, L); we keep it transposed (L, C) for the kernel.
    w_t = jax.random.uniform(kw, (latent_space, num_of_classes),
                             jnp.float32, -bound, bound)
    b = jax.random.uniform(kb, (1, num_of_classes), jnp.float32, -bound, bound)
    return w_t, b


def _ref_bf16(x, w_t, b):
    # Reference matching the kernel's numerics (bf16 operands, f32 accum/softmax).
    logits = jnp.dot(x.astype(jnp.bfloat16), w_t.astype(jnp.bfloat16),
                     preferred_element_type=jnp.float32) + b
    return jax.nn.softmax(logits, axis=-1)


if __name__ == "__main__":
    latent_space = 32
    num_of_classes = 8
    batch = 2

    key = jax.random.PRNGKey(0)
    kx, kp, kx2 = jax.random.split(key, 3)
    x = jax.random.normal(kx, (batch, latent_space), jnp.float32)
    w_t, b = init_params(kp, latent_space, num_of_classes)

    out = jax.block_until_ready(m1_vae_classifier(x, w_t, b))
    assert out.shape == (batch, num_of_classes)

    # Check against a bf16-matched reference (tight) and the pure-f32
    # PyTorch-semantics reference (loose, covers the bf16 operand cast).
    ref_bf = _ref_bf16(x, w_t, b)
    ref_f32 = jax.nn.softmax(x @ w_t + b, axis=-1)
    assert jnp.allclose(out, ref_bf, atol=1e-2, rtol=1e-2)
    assert jnp.allclose(out, ref_f32, atol=3e-2, rtol=3e-2)
    assert jnp.allclose(jnp.sum(out, axis=-1), 1.0, atol=1e-3)

    # Exercise the multi-step grid, partial last block, and B % 16 != 0 paths.
    B2 = 200
    x2 = jax.random.normal(kx2, (B2, latent_space), jnp.float32)
    out2 = jax.block_until_ready(
        m1_vae_classifier(x2, w_t, b, max_rows_per_tile=128))
    assert out2.shape == (B2, num_of_classes)
    assert jnp.allclose(out2, _ref_bf16(x2, w_t, b), atol=1e-2, rtol=1e-2)
    assert jnp.allclose(jnp.sum(out2, axis=-1), 1.0, atol=1e-3)

    print("KERNEL_OK")
</pallas_src>

<mosaic_0001>
module attributes {stable_mosaic.version = 11 : i64} {
  func.func @_packed_classifier_kernel(%arg0: i32, %arg1: memref<1x512xbf16, #tpu.memory_space<vmem>>, %arg2: memref<512x128xbf16, #tpu.memory_space<vmem>>, %arg3: memref<1x128xf32, #tpu.memory_space<vmem>>, %arg4: memref<128x128xf32, #tpu.memory_space<vmem>>, %arg5: memref<1x128xf32, #tpu.memory_space<vmem>>) attributes {dimension_semantics = [#tpu.dimension_semantics<parallel>], iteration_bounds = array<i64: 1>, scalar_prefetch = 0 : i64, scratch_operands = 0 : i64, tpu.core_type = #tpu.core_type<tc>, window_params = [{transform_indices = @transform_0, window_bounds = array<i64: 1, 512>}, {pipeline_mode = #tpu.pipeline_mode<synchronous>, transform_indices = @transform_1, window_bounds = array<i64: 512, 128>}, {pipeline_mode = #tpu.pipeline_mode<synchronous>, transform_indices = @transform_2, window_bounds = array<i64: 1, 128>}, {pipeline_mode = #tpu.pipeline_mode<synchronous>, transform_indices = @transform_3, window_bounds = array<i64: 128, 128>}, {transform_indices = @transform_4, window_bounds = array<i64: 1, 128>}]} {
    %c0 = arith.constant 0 : index
    %c0_0 = arith.constant 0 : index
    %0 = vector.load %arg1[%c0, %c0_0] : memref<1x512xbf16, #tpu.memory_space<vmem>>, vector<1x512xbf16>
    %c0_1 = arith.constant 0 : index
    %c0_2 = arith.constant 0 : index
    %1 = vector.load %arg2[%c0_1, %c0_2] : memref<512x128xbf16, #tpu.memory_space<vmem>>, vector<512x128xbf16>
    %cst = arith.constant dense<0.000000e+00> : vector<1x128xf32>
    %2 = tpu.matmul %0, %1, %cst {dimension_numbers = #tpu.dot_dimension_numbers<[1], [0], [0], [1], [0, 0, 1, 1], [], []>} : vector<1x512xbf16>, vector<512x128xbf16>, vector<1x128xf32> -> vector<1x128xf32>
    %c0_3 = arith.constant 0 : index
    %c0_4 = arith.constant 0 : index
    %3 = vector.load %arg3[%c0_3, %c0_4] : memref<1x128xf32, #tpu.memory_space<vmem>>, vector<1x128xf32>
    %4 = arith.addf %2, %3 : vector<1x128xf32>
    %cst_5 = arith.constant dense<0xFF800000> : vector<1xf32>
    %5 = vector.multi_reduction <maximumf>, %4, %cst_5 [1] : vector<1x128xf32> to vector<1xf32>
    %6 = vector.shape_cast %5 : vector<1xf32> to vector<1x1xf32>
    %7 = vector.broadcast %6 : vector<1x1xf32> to vector<1x128xf32>
    %8 = arith.subf %4, %7 : vector<1x128xf32>
    %9 = math.exp %8 : vector<1x128xf32>
    %c0_6 = arith.constant 0 : index
    %c0_7 = arith.constant 0 : index
    %10 = vector.load %arg4[%c0_6, %c0_7] : memref<128x128xf32, #tpu.memory_space<vmem>>, vector<128x128xf32>
    %cst_8 = arith.constant dense<0.000000e+00> : vector<1x128xf32>
    %11 = tpu.matmul %9, %10, %cst_8 {dimension_numbers = #tpu.dot_dimension_numbers<[1], [0], [0], [1], [0, 0, 1, 1], [], []>} : vector<1x128xf32>, vector<128x128xf32>, vector<1x128xf32> -> vector<1x128xf32>
    %12 = arith.divf %9, %11 : vector<1x128xf32>
    %c0_9 = arith.constant 0 : index
    %c0_10 = arith.constant 0 : index
    %13 = vector.load %arg5[%c0_9, %c0_10] : memref<1x128xf32, #tpu.memory_space<vmem>>, vector<1x128xf32>
    tpu.vector_store %arg5[%c0_9, %c0_10], %12 {strides = array<i32>} : memref<1x128xf32, #tpu.memory_space<vmem>>, vector<1x128xf32>,
    return
  }
  func.func @transform_0(%arg0: i32) -> (i32, i32) {
    %c0_i32 = arith.constant 0 : i32
    %c0_i32_0 = arith.constant 0 : i32
    return %arg0, %c0_i32 : i32, i32
  }
  func.func @transform_1(%arg0: i32) -> (i32, i32) {
    %c0_i32 = arith.constant 0 : i32
    %c0_i32_0 = arith.constant 0 : i32
    %c0_i32_1 = arith.constant 0 : i32
    return %c0_i32, %c0_i32_0 : i32, i32
  }
  func.func @transform_2(%arg0: i32) -> (i32, i32) {
    %c0_i32 = arith.constant 0 : i32
    %c0_i32_0 = arith.constant 0 : i32
    %c0_i32_1 = arith.constant 0 : i32
    return %c0_i32, %c0_i32_0 : i32, i32
  }
  func.func @transform_3(%arg0: i32) -> (i32, i32) {
    %c0_i32 = arith.constant 0 : i32
    %c0_i32_0 = arith.constant 0 : i32
    %c0_i32_1 = arith.constant 0 : i32
    return %c0_i32, %c0_i32_0 : i32, i32
  }
  func.func @transform_4(%arg0: i32) -> (i32, i32) {
    %c0_i32 = arith.constant 0 : i32
    %c0_i32_0 = arith.constant 0 : i32
    return %arg0, %c0_i32 : i32, i32
  }
}

</mosaic_0001>

<bundles_post_ra>
// kernel: tpu_custom_call.1
= control target key start
LH: loop header
LB: loop body
LE: loop exit
PB: predicated region body
PF: predicated region fallthrough
CT: control target
= control target key end

     0   :  { %9 = vsyncpa [#allocation3], 0  ;;  %s867_s0 = inlined_call_operand.hbm [shape: bf16[1,512], index: 0, kind: input, shape index: {}]   ;;  %s868_s1 = inlined_call_operand.hbm [shape: bf16[512,128], index: 1, kind: input, shape index: {}]   ;;  %s869_s2 = inlined_call_operand.vmem [shape: f32[1,128], index: 2, kind: input, shape index: {}]   ;;  %s870_s3 = inlined_call_operand.hbm [shape: f32[128,128], index: 3, kind: input, shape index: {}]   ;;  %s871_s4 = inlined_call_operand.hbm [shape: f32[1,128], index: 4, kind: output, shape index: {}]  }
   0x1   :  { %10 = vsyncpa [#allocation6], 0 }
   0x2   :  { %11 = vsyncpa [#allocation4], 0  ;;  %s799_s15 = smov [#allocation5]  }
   0x3   :  { %s27_s16 = sshll.u32 %s799_s15, 4  ;;  %s28_s16 = int_to_ptr.vmem [resolvable:$true] %s27_s16 }
   0x4   :  { %s721_s17 = scalar_lea.vmem %s28_s16, 4096  ;;  %p726_p1 = scmp.lt.s32.totalorder %s28_s16, %s28_s16 }
   0x5   :  { %p722_p0 = scmp.ne.s32.totalorder %s28_s16, %s721_s17  ;;  %p727_p2 = scmp.lt.s32.totalorder %s721_s17, %s721_s17 }
   0x7   :  { %p728_p3 = por %p727_p2, %p726_p1 }
   0x9   :  { %p729_p4 = pnand %p728_p3, %p722_p0 }
   0xb   :  { %732 = shalt.err (!%p729_p4)
}
   0xc   :  { %s800_s18 = smov 64   ;;  %s801_s19 = smov 4  }
   0xd   :  { %33 = dma.hbm_to_vmem [thread:$0]  %s868_s1, 4096, %s28_s16, [#allocation6], %s800_s18, %s800_s18, %s801_s19  }
   0xe   :  { %s802_s22 = smov [#allocation2]   ;;  %s803_s24 = smov [#allocation7]  }
   0xf   :  { %s18_s23 = sshll.u32 %s802_s22, 4  ;;  %s41_s25 = sshll.u32 %s803_s24, 4  ;;  %s19_s23 = int_to_ptr.vmem [resolvable:$true] %s18_s23  ;;  %s42_s25 = int_to_ptr.vmem [resolvable:$true] %s41_s25 }
  0x10   :  { %s741_s26 = scalar_lea.vmem %s19_s23, 64  ;;  %p746_p6 = scmp.lt.s32.totalorder %s19_s23, %s19_s23 }
  0x11   :  { %p742_p5 = scmp.ne.s32.totalorder %s19_s23, %s741_s26  ;;  %p747_p7 = scmp.lt.s32.totalorder %s741_s26, %s741_s26 }
  0x13   :  { %p748_p8 = por %p747_p7, %p746_p6 }
  0x15   :  { %p749_p9 = pnand %p748_p8, %p742_p5 }
  0x17   :  { %752 = shalt.err (!%p749_p9)
}
  0x18   :  { %21 = dma.hbm_to_vmem [thread:$0]  %s867_s0, 64, %s19_s23, [#allocation3]  }
  0x19   :  { %s761_s29 = scalar_lea.vmem %s42_s25, 2048  ;;  %p766_p11 = scmp.lt.s32.totalorder %s42_s25, %s42_s25 }
  0x1a   :  { %p762_p10 = scmp.ne.s32.totalorder %s42_s25, %s761_s29  ;;  %p767_p12 = scmp.lt.s32.totalorder %s761_s29, %s761_s29 }
  0x1c   :  { %p768_p13 = por %p767_p12, %p766_p11 }
  0x1e   :  { %p769_p0 = pnand %p768_p13, %p762_p10 }
  0x20   :  { %772 = shalt.err (!%p769_p0)
}
  0x21   :  { %s804_s1 = smov 128   ;;  %s805_s30 = smov 8  }
  0x22   :  { %47 = dma.hbm_to_vmem [thread:$0]  %s870_s3, 2048, %s42_s25, [#allocation6], %s804_s1, %s804_s1, %s805_s30  }
  0x23   :  { %793 = dma.done.wait [#allocation3], 64  }
  0x24   :  { %794 = vsyncadd [#allocation3], 4294967232 }
  0x25   :  { %795 = dma.done.wait [#allocation6], 6144  }
  0x26   :  { %796 = vsyncadd [#allocation6], 4294961152  ;;  %v677_v0 = vld [vmem:[#allocation5 + $0x78] sm:$0xff]   ;;  %v681_v4 = vld [vmem:[#allocation5 + $0x70] sm:$0xff]   ;;  %v806_v22 = vmov 1966171168   ;;  %v136_v24 = vlaneseq }
  0x27   :  { %v678_v1 = vld [vmem:[#allocation5 + $0xf8] sm:$0xff]   ;;  %570 = vmatprep.subr.bf16.mxu0 %v677_v0  ;;  %v682_v5 = vld [vmem:[#allocation5 + $0xf0] sm:$0xff]   ;;  %v685_v8 = vld [vmem:[#allocation5 + $0x68] sm:$0xff]   ;;  %v134_v23 = vunpack.c.l.s4 %v806_v22  ;;  %v807_v45 = vmov 0.0   ;;  %vm425_vm0 = vcmask 1040384   ;;  %vm808_vm1 = vmmov 0  }
  0x28   :  { %v679_v2 = vld [vmem:[#allocation5 + $0x38] sm:$0xff]   ;;  %592 = vmatprep.subr.bf16.mxu1 %v678_v1  ;;  %v683_v6 = vld [vmem:[#allocation5 + $0x30] sm:$0xff]   ;;  %v686_v9 = vld [vmem:[#allocation5 + $0xe8] sm:$0xff]   ;;  %v137_v30 = vshrl.u32 %v136_v24, 7 }
  0x29   :  { %v680_v3 = vld [vmem:[#allocation5 + $0xb8] sm:$0xff]   ;;  %571 = vmatpush3.bf16.msra.mxu0 %v679_v2  ;;  %v684_v7 = vld [vmem:[#allocation5 + $0xb0] sm:$0xff]   ;;  %v687_v10 = vld [vmem:[#allocation5 + $0x28] sm:$0xff]   ;;  %v135_v29 = vunpack.c.0.s8 %v134_v23 }
  0x2a   :  { %593 = vmatpush3.bf16.msra.mxu1 %v680_v3  ;;  %572 = vmatprep.subr.bf16.mxu0 %v681_v4  ;;  %v688_v11 = vld [vmem:[#allocation5 + $0xa8] sm:$0xff]   ;;  %v689_v12 = vld [vmem:[#allocation5 + $0x60] sm:$0xff]   ;;  %v693_v16 = vld [vmem:[#allocation5 + $0x58] sm:$0xff]  }
  0x2b   :  { %594 = vmatprep.subr.bf16.mxu1 %v682_v5  ;;  %v690_v13 = vld [vmem:[#allocation5 + $0xe0] sm:$0xff]   ;;  %v694_v17 = vld [vmem:[#allocation5 + $0xd8] sm:$0xff]   ;;  %v697_v20 = vld [vmem:[#allocation5 + $0x50] sm:$0xff]   ;;  %v138_v35 = vsub.s32 %v135_v29, %v137_v30 }
  0x2c   :  { %v691_v14 = vld [vmem:[#allocation5 + $0x20] sm:$0xff]   ;;  %v695_v18 = vld [vmem:[#allocation5 + $0x18] sm:$0xff]   ;;  %v698_v21 = vld [vmem:[#allocation5 + $0xd0] sm:$0xff]  }
  0x2d   :  { %573 = vmatpush3.bf16.msra.mxu0 %v683_v6  ;;  %v692_v15 = vld [vmem:[#allocation5 + $0xa0] sm:$0xff]   ;;  %v696_v19 = vld [vmem:[#allocation5 + $0x98] sm:$0xff]   ;;  %v699_v25 = vld [vmem:[#allocation5 + $0x10] sm:$0xff]  }
  0x2e   :  { %595 = vmatpush3.bf16.msra.mxu1 %v684_v7  ;;  %574 = vmatprep.subr.bf16.mxu0 %v685_v8  ;;  %v700_v26 = vld [vmem:[#allocation5 + $0x90] sm:$0xff]   ;;  %v701_v27 = vld [vmem:[#allocation5 + $0x48] sm:$0xff]   ;;  %v705_v33 = vld [vmem:[#allocation5 + $0x40] sm:$0xff]  }
  0x2f   :  { %596 = vmatprep.subr.bf16.mxu1 %v686_v9  ;;  %v702_v28 = vld [vmem:[#allocation5 + $0xc8] sm:$0xff]   ;;  %v706_v34 = vld [vmem:[#allocation5 + $0xc0] sm:$0xff]   ;;  %v537_v38 = vld.sshfl [vmem:[#allocation2] sm:$0x33 pattern:$0x75316420] }
  0x30   :  { %v703_v31 = vld [vmem:[#allocation5 + $0x8] sm:$0xff]   ;;  %v707_v36 = vld [vmem:[#allocation5] sm:$0xff]   ;;  %v132_v39 = vcombine.high %v537_v38, %v537_v38  ;;  %v139_v40 = vrot.slane %v537_v38, %v138_v35  ;;  %v447_v44 = vld [vmem:[#allocation7 + $0x78] sm:$0xff] }
  0x31   :  { %575 = vmatpush3.bf16.msra.mxu0 %v687_v10  ;;  %v704_v32 = vld [vmem:[#allocation5 + $0x88] sm:$0xff]   ;;  %v708_v37 = vld [vmem:[#allocation5 + $0x80] sm:$0xff]   ;;  %v446_v46 = vld [vmem:[#allocation7 + $0x70] sm:$0xff] }
  0x32   :  { %597 = vmatpush3.bf16.msra.mxu1 %v688_v11  ;;  %576 = vmatprep.subr.bf16.mxu0 %v689_v12  ;;  %v146_v41 = vrot.slane %v132_v39, %v138_v35  ;;  %v147_v42 = vcombine.high %v139_v40, %v139_v40  ;;  %v445_v47 = vld [vmem:[#allocation7 + $0x68] sm:$0xff]  ;;  %v444_v48 = vld [vmem:[#allocation7 + $0x60] sm:$0xff]  ;;  %v443_v49 = vld [vmem:[#allocation7 + $0x58] sm:$0xff] }
  0x33   :  { %598 = vmatprep.subr.bf16.mxu1 %v690_v13  ;;  %v442_v50 = vld [vmem:[#allocation7 + $0x50] sm:$0xff]  ;;  %v123_v53 = vld [vmem:[%s869_s2] sm:$0x1]  ;;  %v441_v1 = vld [vmem:[#allocation7 + $0x48] sm:$0xff]  ;;  %s809_s2 = smov [#allocation8]  }
  0x34   :  { %377 = vmatprep.mubr.bf16.mxu0 %v146_v41  ;;  %v148_v43 = vcombine.high %v146_v41, %v146_v41  ;;  %v440_v2 = vld [vmem:[#allocation7 + $0x40] sm:$0xff]  ;;  %v439_v3 = vld [vmem:[#allocation7 + $0x38] sm:$0xff]  ;;  %v438_v4 = vld [vmem:[#allocation7 + $0x30] sm:$0xff]  ;;  %s527_s7 = sshll.u32 %s809_s2, 4  ;;  %s528_s7 = int_to_ptr.vmem [resolvable:$true] %s527_s7 }
  0x35   :  { %577 = vmatpush3.bf16.msra.mxu0 %v691_v14  ;;  %v437_v5 = vld [vmem:[#allocation7 + $0x28] sm:$0xff]  ;;  %v436_v6 = vld [vmem:[#allocation7 + $0x20] sm:$0xff]  ;;  %v435_v7 = vld [vmem:[#allocation7 + $0x18] sm:$0xff]  ;;  %s773_s8 = scalar_lea.vmem %s528_s7, 16  ;;  %s777_s9 = scalar_lea.vmem %s528_s7, 32 }
  0x36   :  { %599 = vmatpush3.bf16.msra.mxu1 %v692_v15  ;;  %578 = vmatprep.subr.bf16.mxu0 %v693_v16  ;;  %v434_v8 = vld [vmem:[#allocation7 + $0x10] sm:$0xff]  ;;  %v433_v9 = vld [vmem:[#allocation7 + $0x8] sm:$0xff]  ;;  %v432_v10 = vld [vmem:[#allocation7] sm:$0xff]  ;;  %p774_p1 = scmp.ne.s32.totalorder %s528_s7, %s773_s8  ;;  %p778_p2 = scmp.lt.s32.totalorder %s528_s7, %s528_s7 }
  0x37   :  { %600 = vmatprep.subr.bf16.mxu1 %v694_v17  ;;  %417 = vmatprep.mubr.bf16.mxu1 %v148_v43  ;;  %p779_p3 = scmp.lt.s32.totalorder %s777_s9, %s773_s8 }
  0x39   :  { %579 = vmatpush3.bf16.msra.mxu0 %v695_v18  ;;  %p780_p4 = por %p779_p3, %p778_p2 }
  0x3a   :  { %601 = vmatpush3.bf16.msra.mxu1 %v696_v19  ;;  %580 = vmatprep.subr.bf16.mxu0 %v697_v20 }
  0x3b   :  { %602 = vmatprep.subr.bf16.mxu1 %v698_v21  ;;  %p781_p5 = pnand %p780_p4, %p774_p1 }
  0x3d   :  { %581 = vmatpush3.bf16.msra.mxu0 %v699_v25 }
  0x3e   :  { %603 = vmatpush3.bf16.msra.mxu1 %v700_v26  ;;  %582 = vmatprep.subr.bf16.mxu0 %v701_v27 }
  0x3f   :  { %604 = vmatprep.subr.bf16.mxu1 %v702_v28 }
  0x41   :  { %583 = vmatpush3.bf16.msra.mxu0 %v703_v31 }
  0x42   :  { %605 = vmatpush3.bf16.msra.mxu1 %v704_v32  ;;  %584 = vmatprep.subr.bf16.mxu0 %v705_v33 }
  0x43   :  { %606 = vmatprep.subr.bf16.mxu1 %v706_v34 }
  0x45   :  { %585 = vmatpush3.bf16.msra.mxu0 %v707_v36 }
  0x46   :  { %607 = vmatpush3.bf16.msra.mxu1 %v708_v37  ;;  %631 = vmatprep.subr.mxu0 %v807_v45 }
  0x48   :  { %378 = vmatmul.mubr.bf16.vlgmr.msra.gmra.mxu0 %v139_v40 }
  0x49   :  { %418 = vmatmul.mubr.bf16.vlgmr.msra.gmra.mxu1 %v147_v42  ;;  %632 = vmatpush3.msra.mxu0 %v447_v44 }
  0x4a   :  { %633 = vmatprep.subr.mxu0 %v807_v45  ;;  %663 = vmatprep.mubr.msk.f32.mxu0 %vm808_vm1, %v807_v45 }
  0x4b   :  { %634 = vmatpush3.msra.mxu0 %v446_v46 }
  0x4c   :  { %635 = vmatprep.subr.mxu0 %v807_v45 }
  0x4d   :  { %636 = vmatpush3.msra.mxu0 %v445_v47 }
  0x4e   :  { %637 = vmatprep.subr.mxu0 %v807_v45 }
  0x4f   :  { %638 = vmatpush3.msra.mxu0 %v444_v48 }
  0x50   :  { %639 = vmatprep.subr.mxu0 %v807_v45 }
  0x51   :  { %640 = vmatpush3.msra.mxu0 %v443_v49 }
  0x52   :  { %641 = vmatprep.subr.mxu0 %v807_v45 }
  0x53   :  { %642 = vmatpush3.msra.mxu0 %v442_v50 }
  0x54   :  { %643 = vmatprep.subr.mxu0 %v807_v45 }
  0x55   :  { %644 = vmatpush3.msra.mxu0 %v441_v1 }
  0x56   :  { %645 = vmatprep.subr.mxu0 %v807_v45 }
  0x57   :  { %646 = vmatpush3.msra.mxu0 %v440_v2 }
  0x58   :  { %647 = vmatprep.subr.mxu0 %v807_v45 }
  0x59   :  { %648 = vmatpush3.msra.mxu0 %v439_v3 }
  0x5a   :  { %649 = vmatprep.subr.mxu0 %v807_v45 }
  0x5b   :  { %650 = vmatpush3.msra.mxu0 %v438_v4 }
  0x5c   :  { %651 = vmatprep.subr.mxu0 %v807_v45 }
  0x5d   :  { %652 = vmatpush3.msra.mxu0 %v437_v5 }
  0x5e   :  { %653 = vmatprep.subr.mxu0 %v807_v45 }
  0x5f   :  { %654 = vmatpush3.msra.mxu0 %v436_v6 }
  0x60   :  { %655 = vmatprep.subr.mxu0 %v807_v45 }
  0x61   :  { %656 = vmatpush3.msra.mxu0 %v435_v7 }
  0x62   :  { %657 = vmatprep.subr.mxu0 %v807_v45 }
  0x63   :  { %658 = vmatpush3.msra.mxu0 %v434_v8 }
  0x64   :  { %659 = vmatprep.subr.mxu0 %v807_v45 }
  0x65   :  { %660 = vmatpush3.msra.mxu0 %v433_v9 }
  0x66   :  { %661 = vmatprep.subr.mxu0 %v807_v45 }
  0x67   :  { %662 = vmatpush3.msra.mxu0 %v432_v10 }
 0x108   :  { %v586_v51 = vpop.f32.mrf.mxu0 }
 0x109   :  { %v608_v52 = vpop.f32.mrf.mxu1 }
 0x10a   :  { %v587_v54 = vpop.f32.mrf.mxu0 }
 0x10b   :  { %v588_v55 = vadd.f32 %v587_v54, %v586_v51  ;;  %v609_v56 = vpop.f32.mrf.mxu1 }
 0x10c   :  { %v589_v57 = vpop.f32.mrf.mxu0  ;;  %v610_v59 = vadd.f32 %v609_v56, %v608_v52 }
 0x10d   :  { %v380_v58 = vadd.f32 %v588_v55, %v123_v53  ;;  %v611_v60 = vpop.f32.mrf.mxu1 }
 0x10e   :  { %v590_v61 = vpop.f32.mrf.mxu0 }
 0x10f   :  { %v420_v62 = vadd.f32 %v610_v59, %v380_v58  ;;  %v612_v63 = vpop.f32.mrf.mxu1 }
 0x111   :  { %v426_v0 = vsel %vm425_vm0, %v420_v62, -inf }
 0x112   :  { %427 = vmax.xlane.f32.xlu0 %v426_v0 }
 0x19b   :  { %v428_v11 = vpop.xlane.xlu0 %427 }
 0x19c   :  { %v429_v12 = vsub.f32 %v420_v62, %v428_v11 }
 0x19e   :  { %v430_v13 = vmul.f32 1.442695, %v429_v12 }
 0x1a0   :  { %709 = vpow2.f32 %v430_v13 }
 0x1ad   :  { %v710_v14 = vpop.eup %709 }
 0x1ae   :  { %664 = vmatmul.mubr.f32.vlgmr.msra.gmra.mxu0 %v710_v14 }
 0x26e   :  { %v514_v15 = vpop.f32.mrf.mxu0 }
 0x26f   :  { %711 = vrcp.f32 %v514_v15 }
 0x270   :  { %v665_v16 = vpop.f32.mrf.mxu0 }
 0x27c   :  { %v712_v17 = vpop.eup %711 }
 0x27d   :  { %v519_v18 = vmul.f32 %v712_v17, %v710_v14 }
 0x27f   :  { %520 = vst [vmem:[#allocation8] sm:$0x1] %v519_v18 }
 0x280   :  { %784 = shalt.err (!%p781_p5)
}
 0x281   :  { %530 = dma.vmem_to_hbm [thread:$0]  %s528_s7, 16, %s871_s4, [#allocation4]  }
 0x282   :  { %797 = dma.done.wait [#allocation4], 16  }
 0x283   :  { %798 = vsyncadd [#allocation4], 4294967280 }
 0x284   :  { %534 = vsyncpa [#allocation3], 1 }
 0x285   :  { %535 = vsyncpa [#allocation6], 1 }
 0x286   :  { %536 = vsyncpa [#allocation4], 1 }

</bundles_post_ra>
